<compile_context>
chip_gen: v7x
topology: tpu7x:2x2x1
jax: 0.10.0
libtpu: 0.0.40
codegen_flags: <defaults>
</compile_context>

<pallas_src>
import jax
import jax.numpy as jnp
from jax.experimental import pallas as pl
from jax.experimental.pallas import tpu as pltpu


def _round_up(v, m):
    return ((v + m - 1) // m) * m


def _gcn_kernel(a_ref, x_ref, w_ref, b_ref, wfc_ref, bfc_ref, out_ref):
    """One graph per grid step; whole forward in VMEM, all matmuls on the MXU.

    a_ref:  [1, Np, Np]   normalized adjacency (this graph)
    x_ref:  [1, Np, Fp]   input node features (lane-padded)
    w_ref:  [4, Fp, Fp]   stacked GraphConv weights (resident across grid)
    b_ref:  [4, 1, Fp]    stacked GraphConv biases
    wfc_ref:[Fp, Cp]      fc weight
    bfc_ref:[1, Cp]       fc bias
    out_ref:[1, Np, Cp]   lane-dense output slab
    """
    a = a_ref[0].astype(jnp.bfloat16)     # [Np, Np] bf16 for the MXU
    x = x_ref[0]                          # [Np, Fp] f32

    def gconv(h, i):
        # A_hat @ h @ W_i + b_i  (== DGL GraphConv with norm='both')
        agg = jnp.dot(a, h.astype(jnp.bfloat16),
                      preferred_element_type=jnp.float32)          # [Np, Fp] f32
        hw = jnp.dot(agg.astype(jnp.bfloat16),
                     w_ref[i].astype(jnp.bfloat16),
                     preferred_element_type=jnp.float32)           # [Np, Fp] f32
        return hw + b_ref[i]                                       # bias in f32

    h = jnp.maximum(gconv(x, 0), 0.0)          # layer1 + relu
    h = jnp.maximum(gconv(h + x, 1), 0.0)      # layer2 + relu (residual)
    h = jnp.maximum(gconv(h + x, 2), 0.0)      # layer3 + relu (residual)
    h = jnp.maximum(gconv(h + x, 3), 0.0)      # layer4 + relu (residual)

    out = jnp.dot(h.astype(jnp.bfloat16), wfc_ref[...].astype(jnp.bfloat16),
                  preferred_element_type=jnp.float32) + bfc_ref[...]
    out_ref[0] = out


def gcn_forward_batched(a_hat, x, params):
    """a_hat: [B, N, N], x: [B, N, F]; params w1..w4 [F,F], b1..b4 [1,F],
    wfc [F,C], bfc [1,C].  Returns [B, N, C]."""
    B, N, _ = a_hat.shape
    F = x.shape[2]
    C = params["wfc"].shape[1]

    Np = _round_up(N, 8)        # sublane multiple
    Fp = _round_up(F, 128)      # lane-dense features
    Cp = _round_up(C, 128)      # lane-dense fc output

    # Zero-padding is exact: padded feature columns / weight rows+cols / bias
    # entries are zero and stay zero through aggregation, relu and residuals.
    a_p = jnp.zeros((B, Np, Np), jnp.float32).at[:, :N, :N].set(a_hat)
    x_p = jnp.zeros((B, Np, Fp), jnp.float32).at[:, :N, :F].set(x)

    w_stack = jnp.zeros((4, Fp, Fp), jnp.float32)
    b_stack = jnp.zeros((4, 1, Fp), jnp.float32)
    for i, name in enumerate(("1", "2", "3", "4")):
        w_stack = w_stack.at[i, :F, :F].set(params["w" + name])
        b_stack = b_stack.at[i, :, :F].set(params["b" + name])
    wfc_p = jnp.zeros((Fp, Cp), jnp.float32).at[:F, :C].set(params["wfc"])
    bfc_p = jnp.zeros((1, Cp), jnp.float32).at[:, :C].set(params["bfc"])

    grid_spec = pltpu.PrefetchScalarGridSpec(
        num_scalar_prefetch=0,
        grid=(B,),
        in_specs=[
            pl.BlockSpec((1, Np, Np), lambda b: (b, 0, 0)),   # this graph's A
            pl.BlockSpec((1, Np, Fp), lambda b: (b, 0, 0)),   # this graph's x
            pl.BlockSpec((4, Fp, Fp), lambda b: (0, 0, 0)),   # weights: resident
            pl.BlockSpec((4, 1, Fp), lambda b: (0, 0, 0)),    # biases: resident
            pl.BlockSpec((Fp, Cp), lambda b: (0, 0)),         # fc weight: resident
            pl.BlockSpec((1, Cp), lambda b: (0, 0)),          # fc bias: resident
        ],
        out_specs=pl.BlockSpec((1, Np, Cp), lambda b: (b, 0, 0)),
    )

    out = pl.pallas_call(
        _gcn_kernel,
        out_shape=jax.ShapeDtypeStruct((B, Np, Cp), jnp.float32),
        grid_spec=grid_spec,
        compiler_params=pltpu.CompilerParams(
            dimension_semantics=("parallel",)),   # shard graphs across TCs (v7x)
    )(a_p, x_p, w_stack, b_stack, wfc_p, bfc_p)

    # TODO(synk): for N large enough that A_hat (N^2 f32/bf16) no longer fits
    # VMEM, tile the A@h product over row/column blocks with an accumulator.
    return out[:, :N, :C]


def gcn_forward(a_hat, x, params):
    """Single-graph entry matching the torch module (including .squeeze())."""
    out = gcn_forward_batched(a_hat[None], x[None], params)[0]
    return jnp.squeeze(out)


def _reference_single(a_hat, x, p):
    def gconv(h, w, b):
        return a_hat @ h @ w + b
    h = jax.nn.relu(gconv(x, p["w1"], p["b1"]))
    h = jax.nn.relu(gconv(h + x, p["w2"], p["b2"]))
    h = jax.nn.relu(gconv(h + x, p["w3"], p["b3"]))
    h = jax.nn.relu(gconv(h + x, p["w4"], p["b4"]))
    return h @ p["wfc"] + p["bfc"]


if __name__ == "__main__":
    # Small shapes: B graphs, N nodes, F = in = hidden = fc features, C classes.
    B, N, F, C = 4, 64, 32, 8

    key = jax.random.PRNGKey(0)
    k_adj, k_x, *k_w = jax.random.split(key, 12)

    # Deterministic random undirected graphs with self-loops, 'both' norm.
    logits = jax.random.uniform(k_adj, (B, N, N))
    adj = (logits + jnp.swapaxes(logits, -1, -2) > 1.2).astype(jnp.float32)
    adj = adj + jnp.eye(N, dtype=jnp.float32)[None]
    deg = jnp.sum(adj, axis=-1)
    d_inv_sqrt = 1.0 / jnp.sqrt(deg)
    a_hat = adj * d_inv_sqrt[:, :, None] * d_inv_sqrt[:, None, :]   # [B, N, N]

    x = jax.random.normal(k_x, (B, N, F), dtype=jnp.float32)        # [B, N, F]

    def init_w(k, shape, fan_in):
        return jax.random.normal(k, shape, dtype=jnp.float32) / jnp.sqrt(fan_in)

    params = {
        "w1": init_w(k_w[0], (F, F), F), "b1": jnp.zeros((1, F), jnp.float32),
        "w2": init_w(k_w[1], (F, F), F), "b2": jnp.zeros((1, F), jnp.float32),
        "w3": init_w(k_w[2], (F, F), F), "b3": jnp.zeros((1, F), jnp.float32),
        "w4": init_w(k_w[3], (F, F), F), "bfc": 0.01 * jnp.ones((1, C), jnp.float32),
        "b4": jnp.zeros((1, F), jnp.float32),
        "wfc": init_w(k_w[4], (F, C), F),
    }

    out = gcn_forward_batched(a_hat, x, params)
    out = jax.block_until_ready(out)
    assert out.shape == (B, N, C), out.shape

    # f32 reference; kernel uses bf16 MXU inputs w/ f32 accumulation -> loose tol.
    ref = jnp.stack([_reference_single(a_hat[b], x[b], params) for b in range(B)])
    err = jnp.max(jnp.abs(out - ref)) / (jnp.max(jnp.abs(ref)) + 1e-6)
    assert err < 5e-2, f"mismatch vs reference: rel-max err {err}"

    # Single-graph path (matches torch forward incl. squeeze()).
    out0 = jax.block_until_ready(gcn_forward(a_hat[0], x[0], params))
    assert out0.shape == (N, C), out0.shape

    print("KERNEL_OK")
</pallas_src>

<mosaic_0001>
module attributes {stable_mosaic.version = 11 : i64} {
  func.func @_gcn_kernel(%arg0: i32, %arg1: memref<1x64x64xf32, #tpu.memory_space<vmem>>, %arg2: memref<1x64x128xf32, #tpu.memory_space<vmem>>, %arg3: memref<4x128x128xf32, #tpu.memory_space<vmem>>, %arg4: memref<4x1x128xf32, #tpu.memory_space<vmem>>, %arg5: memref<128x128xf32, #tpu.memory_space<vmem>>, %arg6: memref<1x128xf32, #tpu.memory_space<vmem>>, %arg7: memref<1x64x128xf32, #tpu.memory_space<vmem>>) attributes {dimension_semantics = [#tpu.dimension_semantics<parallel>], iteration_bounds = array<i64: 4>, scalar_prefetch = 0 : i64, scratch_operands = 0 : i64, tpu.core_type = #tpu.core_type<tc>, window_params = [{transform_indices = @transform_0, window_bounds = array<i64: 1, 64, 64>}, {transform_indices = @transform_1, window_bounds = array<i64: 1, 64, 128>}, {pipeline_mode = #tpu.pipeline_mode<synchronous>, transform_indices = @transform_2, window_bounds = array<i64: 4, 128, 128>}, {pipeline_mode = #tpu.pipeline_mode<synchronous>, transform_indices = @transform_3, window_bounds = array<i64: 4, 1, 128>}, {pipeline_mode = #tpu.pipeline_mode<synchronous>, transform_indices = @transform_4, window_bounds = array<i64: 128, 128>}, {pipeline_mode = #tpu.pipeline_mode<synchronous>, transform_indices = @transform_5, window_bounds = array<i64: 1, 128>}, {transform_indices = @transform_6, window_bounds = array<i64: 1, 64, 128>}]} {
    %c0 = arith.constant 0 : index
    %c0_0 = arith.constant 0 : index
    %c0_1 = arith.constant 0 : index
    %0 = vector.load %arg1[%c0, %c0_0, %c0_1] : memref<1x64x64xf32, #tpu.memory_space<vmem>>, vector<1x64x64xf32>
    %1 = vector.shape_cast %0 : vector<1x64x64xf32> to vector<64x64xf32>
    %2 = arith.truncf %1 : vector<64x64xf32> to vector<64x64xbf16>
    %c0_2 = arith.constant 0 : index
    %c0_3 = arith.constant 0 : index
    %c0_4 = arith.constant 0 : index
    %3 = vector.load %arg2[%c0_2, %c0_3, %c0_4] : memref<1x64x128xf32, #tpu.memory_space<vmem>>, vector<1x64x128xf32>
    %4 = vector.shape_cast %3 : vector<1x64x128xf32> to vector<64x128xf32>
    %5 = arith.truncf %4 : vector<64x128xf32> to vector<64x128xbf16>
    %cst = arith.constant dense<0.000000e+00> : vector<64x128xf32>
    %6 = tpu.matmul %2, %5, %cst {dimension_numbers = #tpu.dot_dimension_numbers<[1], [0], [0], [1], [0, 0, 1, 1], [], []>} : vector<64x64xbf16>, vector<64x128xbf16>, vector<64x128xf32> -> vector<64x128xf32>
    %7 = arith.truncf %6 : vector<64x128xf32> to vector<64x128xbf16>
    %c0_5 = arith.constant 0 : index
    %c0_6 = arith.constant 0 : index
    %c0_7 = arith.constant 0 : index
    %8 = vector.load %arg3[%c0_5, %c0_6, %c0_7] : memref<4x128x128xf32, #tpu.memory_space<vmem>>, vector<1x128x128xf32>
    %9 = vector.shape_cast %8 : vector<1x128x128xf32> to vector<128x128xf32>
    %10 = arith.truncf %9 : vector<128x128xf32> to vector<128x128xbf16>
    %cst_8 = arith.constant dense<0.000000e+00> : vector<64x128xf32>
    %11 = tpu.matmul %7, %10, %cst_8 {dimension_numbers = #tpu.dot_dimension_numbers<[1], [0], [0], [1], [0, 0, 1, 1], [], []>} : vector<64x128xbf16>, vector<128x128xbf16>, vector<64x128xf32> -> vector<64x128xf32>
    %c0_9 = arith.constant 0 : index
    %c0_10 = arith.constant 0 : index
    %c0_11 = arith.constant 0 : index
    %12 = vector.load %arg4[%c0_9, %c0_10, %c0_11] : memref<4x1x128xf32, #tpu.memory_space<vmem>>, vector<1x1x128xf32>
    %13 = vector.shape_cast %12 : vector<1x1x128xf32> to vector<1x128xf32>
    %14 = vector.broadcast %13 : vector<1x128xf32> to vector<64x128xf32>
    %15 = arith.addf %11, %14 : vector<64x128xf32>
    %cst_12 = arith.constant 0.000000e+00 : f32
    %16 = vector.broadcast %cst_12 : f32 to vector<64x128xf32>
    %17 = arith.maximumf %15, %16 : vector<64x128xf32>
    %18 = arith.addf %17, %4 : vector<64x128xf32>
    %19 = arith.truncf %18 : vector<64x128xf32> to vector<64x128xbf16>
    %cst_13 = arith.constant dense<0.000000e+00> : vector<64x128xf32>
    %20 = tpu.matmul %2, %19, %cst_13 {dimension_numbers = #tpu.dot_dimension_numbers<[1], [0], [0], [1], [0, 0, 1, 1], [], []>} : vector<64x64xbf16>, vector<64x128xbf16>, vector<64x128xf32> -> vector<64x128xf32>
    %21 = arith.truncf %20 : vector<64x128xf32> to vector<64x128xbf16>
    %c1 = arith.constant 1 : index
    %c0_14 = arith.constant 0 : index
    %c0_15 = arith.constant 0 : index
    %22 = vector.load %arg3[%c1, %c0_14, %c0_15] : memref<4x128x128xf32, #tpu.memory_space<vmem>>, vector<1x128x128xf32>
    %23 = vector.shape_cast %22 : vector<1x128x128xf32> to vector<128x128xf32>
    %24 = arith.truncf %23 : vector<128x128xf32> to vector<128x128xbf16>
    %cst_16 = arith.constant dense<0.000000e+00> : vector<64x128xf32>
    %25 = tpu.matmul %21, %24, %cst_16 {dimension_numbers = #tpu.dot_dimension_numbers<[1], [0], [0], [1], [0, 0, 1, 1], [], []>} : vector<64x128xbf16>, vector<128x128xbf16>, vector<64x128xf32> -> vector<64x128xf32>
    %c1_17 = arith.constant 1 : index
    %c0_18 = arith.constant 0 : index
    %c0_19 = arith.constant 0 : index
    %26 = vector.load %arg4[%c1_17, %c0_18, %c0_19] : memref<4x1x128xf32, #tpu.memory_space<vmem>>, vector<1x1x128xf32>
    %27 = vector.shape_cast %26 : vector<1x1x128xf32> to vector<1x128xf32>
    %28 = vector.broadcast %27 : vector<1x128xf32> to vector<64x128xf32>
    %29 = arith.addf %25, %28 : vector<64x128xf32>
    %cst_20 = arith.constant 0.000000e+00 : f32
    %30 = vector.broadcast %cst_20 : f32 to vector<64x128xf32>
    %31 = arith.maximumf %29, %30 : vector<64x128xf32>
    %32 = arith.addf %31, %4 : vector<64x128xf32>
    %33 = arith.truncf %32 : vector<64x128xf32> to vector<64x128xbf16>
    %cst_21 = arith.constant dense<0.000000e+00> : vector<64x128xf32>
    %34 = tpu.matmul %2, %33, %cst_21 {dimension_numbers = #tpu.dot_dimension_numbers<[1], [0], [0], [1], [0, 0, 1, 1], [], []>} : vector<64x64xbf16>, vector<64x128xbf16>, vector<64x128xf32> -> vector<64x128xf32>
    %35 = arith.truncf %34 : vector<64x128xf32> to vector<64x128xbf16>
    %c2 = arith.constant 2 : index
    %c0_22 = arith.constant 0 : index
    %c0_23 = arith.constant 0 : index
    %36 = vector.load %arg3[%c2, %c0_22, %c0_23] : memref<4x128x128xf32, #tpu.memory_space<vmem>>, vector<1x128x128xf32>
    %37 = vector.shape_cast %36 : vector<1x128x128xf32> to vector<128x128xf32>
    %38 = arith.truncf %37 : vector<128x128xf32> to vector<128x128xbf16>
    %cst_24 = arith.constant dense<0.000000e+00> : vector<64x128xf32>
    %39 = tpu.matmul %35, %38, %cst_24 {dimension_numbers = #tpu.dot_dimension_numbers<[1], [0], [0], [1], [0, 0, 1, 1], [], []>} : vector<64x128xbf16>, vector<128x128xbf16>, vector<64x128xf32> -> vector<64x128xf32>
    %c2_25 = arith.constant 2 : index
    %c0_26 = arith.constant 0 : index
    %c0_27 = arith.constant 0 : index
    %40 = vector.load %arg4[%c2_25, %c0_26, %c0_27] : memref<4x1x128xf32, #tpu.memory_space<vmem>>, vector<1x1x128xf32>
    %41 = vector.shape_cast %40 : vector<1x1x128xf32> to vector<1x128xf32>
    %42 = vector.broadcast %41 : vector<1x128xf32> to vector<64x128xf32>
    %43 = arith.addf %39, %42 : vector<64x128xf32>
    %cst_28 = arith.constant 0.000000e+00 : f32
    %44 = vector.broadcast %cst_28 : f32 to vector<64x128xf32>
    %45 = arith.maximumf %43, %44 : vector<64x128xf32>
    %46 = arith.addf %45, %4 : vector<64x128xf32>
    %47 = arith.truncf %46 : vector<64x128xf32> to vector<64x128xbf16>
    %cst_29 = arith.constant dense<0.000000e+00> : vector<64x128xf32>
    %48 = tpu.matmul %2, %47, %cst_29 {dimension_numbers = #tpu.dot_dimension_numbers<[1], [0], [0], [1], [0, 0, 1, 1], [], []>} : vector<64x64xbf16>, vector<64x128xbf16>, vector<64x128xf32> -> vector<64x128xf32>
    %49 = arith.truncf %48 : vector<64x128xf32> to vector<64x128xbf16>
    %c3 = arith.constant 3 : index
    %c0_30 = arith.constant 0 : index
    %c0_31 = arith.constant 0 : index
    %50 = vector.load %arg3[%c3, %c0_30, %c0_31] : memref<4x128x128xf32, #tpu.memory_space<vmem>>, vector<1x128x128xf32>
    %51 = vector.shape_cast %50 : vector<1x128x128xf32> to vector<128x128xf32>
    %52 = arith.truncf %51 : vector<128x128xf32> to vector<128x128xbf16>
    %cst_32 = arith.constant dense<0.000000e+00> : vector<64x128xf32>
    %53 = tpu.matmul %49, %52, %cst_32 {dimension_numbers = #tpu.dot_dimension_numbers<[1], [0], [0], [1], [0, 0, 1, 1], [], []>} : vector<64x128xbf16>, vector<128x128xbf16>, vector<64x128xf32> -> vector<64x128xf32>
    %c3_33 = arith.constant 3 : index
    %c0_34 = arith.constant 0 : index
    %c0_35 = arith.constant 0 : index
    %54 = vector.load %arg4[%c3_33, %c0_34, %c0_35] : memref<4x1x128xf32, #tpu.memory_space<vmem>>, vector<1x1x128xf32>
    %55 = vector.shape_cast %54 : vector<1x1x128xf32> to vector<1x128xf32>
    %56 = vector.broadcast %55 : vector<1x128xf32> to vector<64x128xf32>
    %57 = arith.addf %53, %56 : vector<64x128xf32>
    %cst_36 = arith.constant 0.000000e+00 : f32
    %58 = vector.broadcast %cst_36 : f32 to vector<64x128xf32>
    %59 = arith.maximumf %57, %58 : vector<64x128xf32>
    %60 = arith.truncf %59 : vector<64x128xf32> to vector<64x128xbf16>
    %c0_37 = arith.constant 0 : index
    %c0_38 = arith.constant 0 : index
    %61 = vector.load %arg5[%c0_37, %c0_38] : memref<128x128xf32, #tpu.memory_space<vmem>>, vector<128x128xf32>
    %62 = arith.truncf %61 : vector<128x128xf32> to vector<128x128xbf16>
    %cst_39 = arith.constant dense<0.000000e+00> : vector<64x128xf32>
    %63 = tpu.matmul %60, %62, %cst_39 {dimension_numbers = #tpu.dot_dimension_numbers<[1], [0], [0], [1], [0, 0, 1, 1], [], []>} : vector<64x128xbf16>, vector<128x128xbf16>, vector<64x128xf32> -> vector<64x128xf32>
    %c0_40 = arith.constant 0 : index
    %c0_41 = arith.constant 0 : index
    %64 = vector.load %arg6[%c0_40, %c0_41] : memref<1x128xf32, #tpu.memory_space<vmem>>, vector<1x128xf32>
    %65 = vector.broadcast %64 : vector<1x128xf32> to vector<64x128xf32>
    %66 = arith.addf %63, %65 : vector<64x128xf32>
    %c0_42 = arith.constant 0 : index
    %c0_43 = arith.constant 0 : index
    %c0_44 = arith.constant 0 : index
    %67 = vector.load %arg7[%c0_42, %c0_43, %c0_44] : memref<1x64x128xf32, #tpu.memory_space<vmem>>, vector<1x64x128xf32>
    %68 = vector.shape_cast %67 : vector<1x64x128xf32> to vector<64x128xf32>
    %69 = vector.shape_cast %66 : vector<64x128xf32> to vector<1x64x128xf32>
    tpu.vector_store %arg7[%c0_42, %c0_43, %c0_44], %69 {strides = array<i32>} : memref<1x64x128xf32, #tpu.memory_space<vmem>>, vector<1x64x128xf32>,
    return
  }
  func.func @transform_0(%arg0: i32) -> (i32, i32, i32) {
    %c0_i32 = arith.constant 0 : i32
    %c0_i32_0 = arith.constant 0 : i32
    %c0_i32_1 = arith.constant 0 : i32
    return %arg0, %c0_i32, %c0_i32_0 : i32, i32, i32
  }
  func.func @transform_1(%arg0: i32) -> (i32, i32, i32) {
    %c0_i32 = arith.constant 0 : i32
    %c0_i32_0 = arith.constant 0 : i32
    %c0_i32_1 = arith.constant 0 : i32
    return %arg0, %c0_i32, %c0_i32_0 : i32, i32, i32
  }
  func.func @transform_2(%arg0: i32) -> (i32, i32, i32) {
    %c0_i32 = arith.constant 0 : i32
    %c0_i32_0 = arith.constant 0 : i32
    %c0_i32_1 = arith.constant 0 : i32
    %c0_i32_2 = arith.constant 0 : i32
    return %c0_i32, %c0_i32_0, %c0_i32_1 : i32, i32, i32
  }
  func.func @transform_3(%arg0: i32) -> (i32, i32, i32) {
    %c0_i32 = arith.constant 0 : i32
    %c0_i32_0 = arith.constant 0 : i32
    %c0_i32_1 = arith.constant 0 : i32
    %c0_i32_2 = arith.constant 0 : i32
    return %c0_i32, %c0_i32_0, %c0_i32_1 : i32, i32, i32
  }
  func.func @transform_4(%arg0: i32) -> (i32, i32) {
    %c0_i32 = arith.constant 0 : i32
    %c0_i32_0 = arith.constant 0 : i32
    %c0_i32_1 = arith.constant 0 : i32
    return %c0_i32, %c0_i32_0 : i32, i32
  }
  func.func @transform_5(%arg0: i32) -> (i32, i32) {
    %c0_i32 = arith.constant 0 : i32
    %c0_i32_0 = arith.constant 0 : i32
    %c0_i32_1 = arith.constant 0 : i32
    return %c0_i32, %c0_i32_0 : i32, i32
  }
  func.func @transform_6(%arg0: i32) -> (i32, i32, i32) {
    %c0_i32 = arith.constant 0 : i32
    %c0_i32_0 = arith.constant 0 : i32
    %c0_i32_1 = arith.constant 0 : i32
    return %arg0, %c0_i32, %c0_i32_0 : i32, i32, i32
  }
}

</mosaic_0001>

<bundles_post_ra>
// kernel: tpu_custom_call.1
= control target key start
LH: loop header
LB: loop body
LE: loop exit
PB: predicated region body
PF: predicated region fallthrough
CT: control target
= control target key end

     0   :  { %s2390_s0 = inlined_call_operand.hbm [shape: f32[4,64,64], index: 0, kind: input, shape index: {}]   ;;  %s2391_s1 = inlined_call_operand.hbm [shape: f32[4,64,128], index: 1, kind: input, shape index: {}]   ;;  %s2392_s2 = inlined_call_operand.hbm [shape: f32[4,128,128], index: 2, kind: input, shape index: {}]   ;;  %s2393_s3 = inlined_call_operand.vmem [shape: f32[4,1,128], index: 3, kind: input, shape index: {}]   ;;  %s2394_s4 = inlined_call_operand.hbm [shape: f32[128,128], index: 4, kind: input, shape index: {}]   ;;  %s2395_s5 = inlined_call_operand.vmem [shape: f32[1,128], index: 5, kind: input, shape index: {}]   ;;  %s2396_s6 = inlined_call_operand.hbm [shape: f32[4,64,128], index: 6, kind: output, shape index: {}]  }
   0x1   :  { %2404 = sst [smem:[#allocation16_spill]] %s2390_s0 }
   0x2   :  { %2405 = sst [smem:[#allocation17_spill]] %s2392_s2 }
   0x3   :  { %2406 = sst [smem:[#allocation18_spill]] %s2394_s4 }
   0x4   :  { %11 = vsyncpa [#allocation3], 0 }
   0x5   :  { %13 = vsyncpa [#allocation3 + $0x1], 0 }
   0x6   :  { %14 = vsyncpa [#allocation6], 0 }
   0x7   :  { %16 = vsyncpa [#allocation6 + $0x1], 0 }
   0x8   :  { %17 = vsyncpa [#allocation9], 0 }
   0x9   :  { %18 = vsyncpa [#allocation4], 0 }
   0xa   :  { %20 = vsyncpa [#allocation4 + $0x1], 0  ;;  %s1989_s21 = smov 0   ;;  %s1991_s22 = smov 0  }
   0xb   :  { %s1993_s23 = smov 0   ;;  %s1995_s24 = smov 0  }
   0xc LB: > { %s2010_s25 = sadd.s32 4294967295, %s1943_s24   ;;  %s1348_s26 = sadd.s32 4294967294, %s1943_s24   ;;  %s1943_s24 = sphi %s1995_s24, %s2429_s24   ;;  %s1939_s23 = sphi %s1993_s23, %s2428_s23   ;;  %s1935_s22 = sphi %s1991_s22, %s2427_s22   ;;  %s1931_s21 = sphi %s1989_s21, %s2426_s21  }
   0xd   : > { %p46_p0 = scmp.ne.s32.totalorder %s1935_s22, %s1931_s21  ;;  %p2397_p1 = scmp.eq.s32.totalorder %s2010_s25, 0 }
   0xe   : > { %p186_p3 = scmp.eq.s32.totalorder %s1348_s26, 3  ;;  %p1349_p5 = scmp.ge.s32.totalorder %s1943_s24, 1 }
   0xf   : > { %p2019_p4 = por %p2397_p1, %p46_p0  ;;  %p193_p7 = scmp.lt.s32.totalorder %s1943_s24, 5 }
  0x10   : > { %p2024_p6 = por %p186_p3, %p46_p0  ;;  %s1945_s30 = smov [#allocation7]  }
  0x11   : > { %s2407_s27 = scalar_select %p2019_p4, 1, 0 }
  0x12   : > { %s2408_s28 = scalar_select %p2024_p6, 1, 0 }
  0x13   : > { %p2029_p8 = pnand %p1349_p5, %p193_p7  ;;  %s205_s7 = sshll.u32 %s1945_s30, 4  ;;  %s206_s7 = int_to_ptr.vmem [resolvable:$true] %s205_s7 }
  0x14   : > { %s1946_s9 = smov [#allocation8]   ;;  %s2411_s2 = sld [smem:[#allocation17_spill]] }
  0x15   : > { %s2409_s29 = scalar_select %p2029_p8, 1, 0 }
  0x16   : > { %p1687_p9 = pneg %p2029_p8  ;;  %s221_s10 = sshll.u32 %s1946_s9, 4  ;;  %s2041_s10 = int_to_ptr.vmem [resolvable:$true] %s221_s10 }
  0x18   : > { %p2037_p10 = pnand %p1687_p9, %p2397_p1 }
  0x1a   : > { %s1749_s13 = scalar_lea.hbm %s2411_s2, 8192  ;;  %p1751_p12 = pneg %p2037_p10 }
  0x1b   : > { %p1750_p11 = scmp.ne.s32.totalorder %s2411_s2, %s1749_s13  ;;  %p1756_p3 = scmp.lt.u32.totalorder %s1749_s13, %s2411_s2 }
  0x1d   : > { %p1752_p13 = pnand %p1751_p12, %p1750_p11 }
  0x1f   : > { %p1753_p0 = pneg %p1752_p13 }
  0x21   : > { %p1758_p5 = pnand %p1756_p3, %p1753_p0 }
  0x23   : > { %1761 = shalt.err (!%p1758_p5)
}
  0x24   : > { %s1762_s18 = scalar_lea.vmem %s206_s7, 8192  ;;  %p1770_p2 = scmp.lt.s32.totalorder %s206_s7, %s206_s7 }
  0x25   : > { %p1763_p7 = scmp.ne.s32.totalorder %s206_s7, %s1762_s18  ;;  %p1771_p6 = scmp.lt.s32.totalorder %s1762_s18, %s1762_s18 }
  0x27   : > { %p1765_p9 = pnand %p1763_p7, %p1751_p12  ;;  %p1772_p4 = por %p1771_p6, %p1770_p2 }
  0x29   : > { %p1766_p1 = pneg %p1765_p9 }
  0x2b   : > { %p1773_p8 = pnand %p1772_p4, %p1766_p1 }
  0x2d   : > { %1776 = shalt.err (!%p1773_p8)
}
  0x2e   : > { %s2400_s19 = smov 128   ;;  %s2402_s20 = smov 8  }
  0x2f   : > { %1690 = dma.hbm_to_vmem [thread:$0]  (!%p2037_p10), %s2411_s2, 8192, %s206_s7, [#allocation6], %s2400_s19, %s2400_s19, %s2402_s20  }
  0x30   : > { %s2412_s4 = sld [smem:[#allocation18_spill]] }
  0x36   : > { %s1777_s12 = scalar_lea.hbm %s2412_s4, 2048 }
  0x37   : > { %p1778_p1 = scmp.ne.s32.totalorder %s2412_s4, %s1777_s12  ;;  %p1784_p6 = scmp.lt.u32.totalorder %s1777_s12, %s2412_s4 }
  0x39   : > { %p1780_p2 = pnand %p1778_p1, %p1751_p12 }
  0x3b   : > { %p1781_p4 = pneg %p1780_p2 }
  0x3d   : > { %p1786_p8 = pnand %p1784_p6, %p1781_p4 }
  0x3f   : > { %1789 = shalt.err (!%p1786_p8)
}
  0x40   : > { %s1790_s7 = scalar_lea.vmem %s2041_s10, 2048  ;;  %p1798_p3 = scmp.lt.s32.totalorder %s2041_s10, %s2041_s10 }
  0x41   : > { %p1791_p11 = scmp.ne.s32.totalorder %s2041_s10, %s1790_s7  ;;  %p1799_p5 = scmp.lt.s32.totalorder %s1790_s7, %s1790_s7 }
  0x43   : > { %p1793_p13 = pnand %p1791_p11, %p1751_p12  ;;  %p1800_p7 = por %p1799_p5, %p1798_p3 }
  0x45   : > { %p1794_p0 = pneg %p1793_p13 }
  0x47   : > { %p1801_p9 = pnand %p1800_p7, %p1794_p0 }
  0x49   : > { %1804 = shalt.err (!%p1801_p9)
}
  0x4a   : > { %1693 = dma.hbm_to_vmem [thread:$0]  (!%p2037_p10), %s2412_s4, 2048, %s2041_s10, [#allocation9], %s2400_s19, %s2400_s19, %s2402_s20  }
  0x4b   : > { %s2097_s8 = sadd.s32 1, %s1943_s24   ;;  %s33_s26 = sadd.s32 1, %s1939_s23 }
  0x4c   : > { %s30_s30 = ssub.s32 %s1943_s24, %s2097_s8  ;;  %p40_p12 = scmp.ne.s32.totalorder %s1939_s23, %s1935_s22 }
  0x4d   : > { %p31_p1 = scmp.eq.s32.totalorder %s30_s30, 0  ;;  %p41_p2 = scmp.eq.s32.totalorder %s1943_s24, 0 }
  0x4e   : > { %p2413_p4 = scmp.eq.s32.totalorder %s2010_s25, 3  ;;  %p1707_p8 = scmp.lt.s32.totalorder %s1943_s24, 4 }
  0x4f   : > { %s2113_s11 = scalar_select %p31_p1, %s1939_s23, %s33_s26  }
  0x50   : > { %p2107_p6 = por %p2413_p4, %p40_p12  ;;  %p42_p11 = por %p41_p2, %p40_p12 }
  0x51   : > { %s238_s12 = sand.u32 1, %s1939_s23   ;;  %s1394_s10 = sshll.u32 %s1943_s24, 10 }
  0x52   : > { %s1353_s13 = sshll.u32 %s238_s12, 6  ;;  %s2415_s0 = sld [smem:[#allocation16_spill]] }
  0x53   : > { %s242_s7 = scalar_lea.vmem [#allocation2], %s1353_s13  ;;  %p2124_p10 = pnand %p1707_p8, %p42_p11 }
  0x54   : > { %s249_s17 = sshll.u32 %s242_s7, 4  ;;  %s2131_s14 = scalar_lea.hbm %s2391_s1, %s1394_s10  ;;  %s2122_s17 = int_to_ptr.vmem [resolvable:$true] %s249_s17 }
  0x55   : > { %s263_s15 = scalar_lea.vmem [#allocation5], %s1353_s13  ;;  %s2135_s20 = scalar_lea.sflag [#allocation3], %s238_s12 }
  0x56   : > { %s2133_s19 = sshll.u32 %s263_s15, 4  ;;  %p1807_p0 = pneg %p2124_p10  ;;  %s2167_s19 = int_to_ptr.vmem [resolvable:$true] %s2133_s19 }
  0x58   : > { %s2120_s16 = scalar_lea.hbm %s2415_s0, %s1394_s10  ;;  %s1810_s26 = scalar_lea.hbm %s2415_s0, 4096 }
  0x59   : > { %s1805_s7 = scalar_lea.hbm %s2120_s16, 1024  ;;  %p1811_p7 = scmp.lt.u32.totalorder %s2120_s16, %s2415_s0 }
  0x5a   : > { %p1806_p13 = scmp.ne.s32.totalorder %s2120_s16, %s1805_s7  ;;  %p1812_p9 = scmp.lt.u32.totalorder %s1810_s26, %s1805_s7 }
  0x5b   : > { %p1814_p1 = scmp.lt.u32.totalorder %s1805_s7, %s2120_s16 }
  0x5c   : > { %p1808_p3 = pnand %p1807_p0, %p1806_p13  ;;  %p1813_p12 = por %p1812_p9, %p1811_p7 }
  0x5e   : > { %p1809_p5 = pneg %p1808_p3  ;;  %p1815_p2 = por %p1814_p1, %p1813_p12 }
  0x60   : > { %p1816_p4 = pnand %p1815_p2, %p1809_p5 }
  0x62   : > { %1819 = shalt.err (!%p1816_p4)
}
  0x63   : > { %s1820_s12 = scalar_lea.vmem %s2122_s17, 1024  ;;  %s1949_s2 = smov [#allocation2]  }
  0x64   : > { %p1821_p8 = scmp.ne.s32.totalorder %s2122_s17, %s1820_s12  ;;  %s1825_s4 = sshll.u32 %s1949_s2, 4  ;;  %s1826_s4 = int_to_ptr.vmem [resolvable:$false] %s1825_s4 }
  0x65   : > { %s1827_s13 = scalar_lea.vmem %s1826_s4, 2048  ;;  %p1828_p3 = scmp.lt.s32.totalorder %s2122_s17, %s1826_s4 }
  0x66   : > { %p1823_p11 = pnand %p1821_p8, %p1807_p0  ;;  %p1829_p7 = scmp.lt.s32.totalorder %s1827_s13, %s1820_s12 }
  0x68   : > { %p1824_p13 = pneg %p1823_p11  ;;  %p1830_p9 = por %p1829_p7, %p1828_p3 }
  0x6a   : > { %p1831_p12 = pnand %p1830_p9, %p1824_p13 }
  0x6c   : > { %1834 = shalt.err (!%p1831_p12)
}
  0x6d   : > { %s2417_s15 = smov 8   ;;  %s2418_s7 = smov 128  }
  0x6e   : > { %1697 = dma.hbm_to_vmem [thread:$0]  (!%p2124_p10), %s2120_s16, 1024, %s2122_s17, %s2135_s20, %s2418_s7, %s2418_s7, %s2417_s15  }
  0x6f   : > { %s259_s26 = sand.u32 1, %s1943_s24   ;;  %s1835_s10 = scalar_lea.hbm %s2131_s14, 1024 }
  0x70   : > { %s2170_s30 = scalar_lea.sflag [#allocation6], %s259_s26  ;;  %p1836_p5 = scmp.ne.s32.totalorder %s2131_s14, %s1835_s10 }
  0x71   : > { %s1840_s4 = scalar_lea.hbm %s2391_s1, 4096  ;;  %p1841_p4 = scmp.lt.u32.totalorder %s2131_s14, %s2391_s1 }
  0x72   : > { %p1838_p1 = pnand %p1836_p5, %p1807_p0  ;;  %p1842_p8 = scmp.lt.u32.totalorder %s1840_s4, %s1835_s10 }
  0x73   : > { %p1844_p13 = scmp.lt.u32.totalorder %s1835_s10, %s2131_s14 }
  0x74   : > { %p1839_p2 = pneg %p1838_p1  ;;  %p1843_p11 = por %p1842_p8, %p1841_p4 }
  0x76   : > { %p1845_p3 = por %p1844_p13, %p1843_p11 }
  0x78   : > { %p1846_p7 = pnand %p1845_p3, %p1839_p2 }
  0x7a   : > { %1849 = shalt.err (!%p1846_p7)
}
  0x7b   : > { %s1850_s20 = scalar_lea.vmem %s2167_s19, 1024  ;;  %s1950_s16 = smov [#allocation5]  }
  0x7c   : > { %p1851_p9 = scmp.ne.s32.totalorder %s2167_s19, %s1850_s20  ;;  %s1855_s17 = sshll.u32 %s1950_s16, 4  ;;  %s1856_s17 = int_to_ptr.vmem [resolvable:$false] %s1855_s17 }
  0x7d   : > { %s1857_s0 = scalar_lea.vmem %s1856_s17, 2048  ;;  %p1858_p1 = scmp.lt.s32.totalorder %s2167_s19, %s1856_s17 }
  0x7e   : > { %p1853_p12 = pnand %p1851_p9, %p1807_p0  ;;  %p1859_p4 = scmp.lt.s32.totalorder %s1857_s0, %s1850_s20 }
  0x80   : > { %p1854_p5 = pneg %p1853_p12  ;;  %p1860_p8 = por %p1859_p4, %p1858_p1 }
  0x82   : > { %p1861_p11 = pnand %p1860_p8, %p1854_p5 }
  0x84   : > { %1864 = shalt.err (!%p1861_p11)
}
  0x85   : > { %1700 = dma.hbm_to_vmem [thread:$0]  (!%p2124_p10), %s2131_s14, 1024, %s2167_s19, %s2170_s30, %s2418_s7, %s2418_s7, %s2417_s15  }
  0x86   : > { %p2419_p0 = scmp.ne.s32.totalorder %s2409_s29, 0 }
  0x87   : > { %s2202_s26 = sand.u32 (!%p2419_p0), 1, %s1935_s22   ;;  %p2420_p2 = scmp.ne.s32.totalorder (!%p2419_p0), %s2407_s27, 0 }
  0x88   : > { %282 = sbr.rel (%p2419_p0) target bundleno = 2223 (0x8af), region = 44  ;;  %s2205_s10 = sshll.u32 (!%p2419_p0), %s2202_s26, 6 }
  0x89   : > { %s285_s18 = scalar_lea.sflag (!%p2419_p0), [#allocation3], %s2202_s26  ;;  %s2209_s12 = scalar_lea.vmem (!%p2419_p0), [#allocation2], %s2205_s10 }
  0x8f   : > { %1910 = dma.done.wait (%p2420_p2), %s285_s18, 1024  }
  0x90   : > { %1912 = vsyncadd (%p2420_p2), %s285_s18, 4294966272  ;;  %s293_s29 = sand.u32 1, %s2010_s25   ;;  %s297_s14 = scalar_lea.vmem [#allocation5], %s2205_s10 }
  0x91   : > { %s294_s19 = scalar_lea.sflag [#allocation6], %s293_s29 }
  0x92   : > { %1914 = dma.done.wait (%p2420_p2), %s294_s19, 1024  }
  0x93   : > { %1916 = vsyncadd (%p2420_p2), %s294_s19, 4294966272  ;;  %p2421_p10 = scmp.eq.s32.totalorder %s2010_s25, 0 }
  0x95   : > { %1918 = dma.done.wait (%p2421_p10), [#allocation6], 8192   ;;  %p2422_p13 = pmov %p2421_p10 }
  0x96   : > { %p2423_p3 = pmov %p2421_p10 }
  0x97   : > { %1920 = vsyncadd (%p2422_p13), [#allocation6], 4294959104 }
  0x98   : > { %1922 = dma.done.wait (%p2423_p3), [#allocation9], 2048   ;;  %p2424_p7 = pmov %p2423_p3 }
  0x99   : > { %v2229_v0 = vld [vmem:[%s297_s14] sm:$0xff]  ;;  %v2231_v1 = vld [vmem:[%s297_s14 + $0x8] sm:$0xff]  ;;  %v2233_v2 = vld [vmem:[%s297_s14 + $0x10] sm:$0xff]  ;;  %vm364_vm0 = vcmask 523264   ;;  %s338_s0 = scalar_lea.vmem [#allocation10], %s2205_s10  ;;  %s1951_s27 = smov [#allocation10]  }
  0x9a   : > { %1924 = vsyncadd (%p2424_p7), [#allocation9], 4294965248  ;;  %v360_v3 = vpack.c.bf16 %v2231_v1, %v2229_v0  ;;  %v2237_v4 = vld [vmem:[%s297_s14 + $0x18] sm:$0xff]  ;;  %v2241_v6 = vld [vmem:[%s297_s14 + $0x20] sm:$0xff]  ;;  %s1233_s18 = sshll.u32 %s338_s0, 4  ;;  %s1869_s15 = sshll.u32 %s1951_s27, 4  ;;  %s2342_s18 = int_to_ptr.vmem [resolvable:$true] %s1233_s18  ;;  %s1870_s15 = int_to_ptr.vmem [resolvable:$false] %s1869_s15 }
  0x9b   : > { %v361_v5 = vpack.c.bf16 %v2237_v4, %v2233_v2  ;;  %v2243_v7 = vld [vmem:[%s297_s14 + $0x28] sm:$0xff]  ;;  %v340_v8 = vld [vmem:[%s2209_s12] sm:$0xff]  ;;  %v2251_v12 = vld [vmem:[%s297_s14 + $0x30] sm:$0xff]  ;;  %s1871_s7 = scalar_lea.vmem %s1870_s15, 2048  ;;  %p1872_p1 = scmp.lt.s32.totalorder %s2342_s18, %s1870_s15 }
  0x9c   : > { %1489 = vmatprep.subr.bf16.mxu0 %v360_v3  ;;  %v341_v9 = vld [vmem:[%s2209_s12 + $0x8] sm:$0xff]  ;;  %v362_v11 = vpack.c.bf16 %v2243_v7, %v2241_v6  ;;  %v446_v13 = vld [vmem:[#allocation7] sm:$0xff]  ;;  %v2253_v15 = vld [vmem:[%s297_s14 + $0x38] sm:$0xff]  ;;  %s1865_s14 = scalar_lea.vmem %s2342_s18, 1024 }
  0x9d   : > { %1490 = vmatpush3.bf16.msra.mxu0 %v360_v3  ;;  %v2247_v10 = vpack.c.bf16 %v341_v9, %v340_v8  ;;  %v447_v14 = vld [vmem:[#allocation7 + $0x8] sm:$0xff]  ;;  %v448_v17 = vld [vmem:[#allocation7 + $0x10] sm:$0xff]  ;;  %v449_v18 = vld [vmem:[#allocation7 + $0x18] sm:$0xff]  ;;  %v363_v22 = vpack.c.bf16 %v2253_v15, %v2251_v12  ;;  %p1866_p9 = scmp.ne.s32.totalorder %s2342_s18, %s1865_s14  ;;  %p1873_p4 = scmp.lt.s32.totalorder %s1871_s7, %s1865_s14 }
  0x9e   : > { %1491 = vmatprep.subr.bf16.mxu0 %v361_v5  ;;  %v462_v16 = vpack.c.bf16 %v447_v14, %v446_v13  ;;  %v463_v19 = vpack.c.bf16 %v449_v18, %v448_v17  ;;  %v450_v20 = vld [vmem:[#allocation7 + $0x20] sm:$0xff]  ;;  %v451_v21 = vld [vmem:[#allocation7 + $0x28] sm:$0xff]  ;;  %v452_v24 = vld [vmem:[#allocation7 + $0x30] sm:$0xff] }
  0x9f   : > { %1497 = vmatprep.mubr.msk.bf16.mxu0 %vm364_vm0, %v2247_v10  ;;  %v464_v23 = vpack.c.bf16 %v451_v21, %v450_v20  ;;  %v453_v25 = vld [vmem:[#allocation7 + $0x38] sm:$0xff]  ;;  %v342_v26 = vld [vmem:[%s2209_s12 + $0x10] sm:$0xff]  ;;  %v344_v28 = vld [vmem:[%s2209_s12 + $0x20] sm:$0xff]  ;;  %p1867_p12 = pnand %p1866_p9, %p2107_p6  ;;  %p1874_p8 = por %p1873_p4, %p1872_p1 }
  0xa0   : > { %1505 = vmatprep.subr.bf16.mxu1 %v462_v16  ;;  %v343_v27 = vld [vmem:[%s2209_s12 + $0x18] sm:$0xff]  ;;  %v345_v29 = vld [vmem:[%s2209_s12 + $0x28] sm:$0xff]  ;;  %v465_v30 = vpack.c.bf16 %v453_v25, %v452_v24  ;;  %v454_v32 = vld [vmem:[#allocation7 + $0x40] sm:$0xff] }
  0xa1   : > { %1492 = vmatpush3.bf16.msra.mxu0 %v361_v5  ;;  %1506 = vmatpush3.bf16.msra.mxu1 %v462_v16  ;;  %v2263_v31 = vpack.c.bf16 %v343_v27, %v342_v26  ;;  %v455_v33 = vld [vmem:[#allocation7 + $0x48] sm:$0xff]  ;;  %v2265_v34 = vpack.c.bf16 %v345_v29, %v344_v28  ;;  %v456_v36 = vld [vmem:[#allocation7 + $0x50] sm:$0xff]  ;;  %v457_v37 = vld [vmem:[#allocation7 + $0x58] sm:$0xff]  ;;  %p1868_p5 = pneg %p1867_p12 }
  0xa2   : > { %1493 = vmatprep.subr.bf16.mxu0 %v362_v11  ;;  %1507 = vmatprep.subr.bf16.mxu1 %v463_v19  ;;  %v466_v35 = vpack.c.bf16 %v455_v33, %v454_v32  ;;  %v346_v38 = vld [vmem:[%s2209_s12 + $0x30] sm:$0xff]  ;;  %v347_v39 = vld [vmem:[%s2209_s12 + $0x38] sm:$0xff]  ;;  %v467_v40 = vpack.c.bf16 %v457_v37, %v456_v36  ;;  %v458_v42 = vld [vmem:[#allocation7 + $0x60] sm:$0xff]  ;;  %s1396_s12 = sshll.u32 %s2010_s25, 10  ;;  %s1220_s25 = scalar_lea.sflag [#allocation4], %s2202_s26 }
  0xa3   : > { %v2273_v41 = vpack.c.bf16 %v347_v39, %v346_v38  ;;  %v459_v43 = vld [vmem:[#allocation7 + $0x68] sm:$0xff]  ;;  %v460_v45 = vld [vmem:[#allocation7 + $0x70] sm:$0xff]  ;;  %v461_v46 = vld [vmem:[#allocation7 + $0x78] sm:$0xff]  ;;  %s2347_s19 = scalar_lea.hbm %s2396_s6, %s1396_s12  ;;  %p1875_p11 = pnand %p1874_p8, %p1868_p5 }
  0xa4   : > { %v468_v44 = vpack.c.bf16 %v459_v43, %v458_v42  ;;  %v469_v47 = vpack.c.bf16 %v461_v46, %v460_v45  ;;  %v1369_v60 = vld [vmem:[%s2393_s3] ss:$0 sm:$0xff]  ;;  %v633_v46 = vld [vmem:[#allocation7 + $0x88] sm:$0xff] }
  0xa5   : > { %1494 = vmatpush3.bf16.msra.mxu0 %v362_v11  ;;  %1508 = vmatpush3.bf16.msra.mxu1 %v463_v19  ;;  %v632_v45 = vld [vmem:[#allocation7 + $0x80] sm:$0xff] }
  0xa6   : > { %1495 = vmatprep.subr.bf16.mxu0 %v363_v22  ;;  %1509 = vmatprep.subr.bf16.mxu1 %v464_v23 }
  0xa9   : > { %1496 = vmatpush3.bf16.msra.mxu0 %v363_v22  ;;  %1510 = vmatpush3.bf16.msra.mxu1 %v464_v23 }
  0xaa   : > { %1511 = vmatprep.subr.bf16.mxu1 %v465_v30 }
  0xac   : > { %1498 = vmatmul.mubr.msk.bf16.vlgmr.msra.gmra.mrb[0].mxu0 %vm364_vm0, %v2263_v31 }
  0xad   : > { %1501 = vmatprep.mubr.msk.bf16.mxu0 %vm364_vm0, %v2265_v34  ;;  %1512 = vmatpush3.bf16.msra.mxu1 %v465_v30 }
  0xae   : > { %1513 = vmatprep.subr.bf16.mxu1 %v466_v35 }
  0xb1   : > { %1514 = vmatpush3.bf16.msra.mxu1 %v466_v35 }
  0xb2   : > { %1515 = vmatprep.subr.bf16.mxu1 %v467_v40 }
  0xb4   : > { %1502 = vmatmul.mubr.msk.bf16.gmra.mrb[4].mxu0 %vm364_vm0, %v2273_v41 }
  0xb5   : > { %1537 = vmatprep.mubr.msk.bf16.mxu0 %vm364_vm0, %v2247_v10  ;;  %1516 = vmatpush3.bf16.msra.mxu1 %v467_v40 }
  0xb6   : > { %1517 = vmatprep.subr.bf16.mxu1 %v468_v44 }
  0xb9   : > { %1518 = vmatpush3.bf16.msra.mxu1 %v468_v44 }
  0xba   : > { %1519 = vmatprep.subr.bf16.mxu1 %v469_v47 }
  0xbd   : > { %1520 = vmatpush3.bf16.msra.mxu1 %v469_v47  ;;  %v648_v47 = vpack.c.bf16 %v633_v46, %v632_v45 }
 0x17f   : > { %v1499_v48 = vpop.f32.mrb[0].mxu0 }
 0x180   : > { %v411_v49 = vpop.f32.mrb[1].mxu0 }
 0x181   : > { %v1500_v50 = vpop.f32.mrb[2].mxu0 }
 0x182   : > { %v443_v51 = vpack.c.bf16 %v1500_v50, %v1499_v48  ;;  %v414_v52 = vpop.f32.mrb[3].mxu0  ;;  %v634_v48 = vld [vmem:[#allocation7 + $0x90] sm:$0xff] }
 0x183   : > { %v442_v53 = vpack.c.bf16 %v414_v52, %v411_v49  ;;  %v635_v49 = vld [vmem:[#allocation7 + $0x98] sm:$0xff]  ;;  %v637_v52 = vld [vmem:[#allocation7 + $0xa8] sm:$0xff] }
 0x184   : > { %v649_v50 = vpack.c.bf16 %v635_v49, %v634_v48 }
 0x185   : > { %1521 = vmatprep.mubr.bf16.mxu1 %v442_v53 }
 0x186   : > { %1522 = vmatmul.mubr.bf16.vlgmr.msra.gmra.mrb[0].mxu1 %v443_v51  ;;  %v636_v51 = vld [vmem:[#allocation7 + $0xa0] sm:$0xff] }
 0x187   : > { %v1503_v54 = vpop.f32.mrb[4].mxu0  ;;  %v650_v53 = vpack.c.bf16 %v637_v52, %v636_v51 }
 0x188   : > { %v427_v55 = vpop.f32.mrb[5].mxu0 }
 0x189   : > { %v1504_v56 = vpop.f32.mrb[6].mxu0 }
 0x18a   : > { %v445_v57 = vpack.c.bf16 %v1504_v56, %v1503_v54  ;;  %v430_v58 = vpop.f32.mrb[7].mxu0  ;;  %v638_v54 = vld [vmem:[#allocation7 + $0xb0] sm:$0xff] }
 0x18b   : > { %v444_v59 = vpack.c.bf16 %v430_v58, %v427_v55  ;;  %v639_v55 = vld [vmem:[#allocation7 + $0xb8] sm:$0xff]  ;;  %v641_v58 = vld [vmem:[#allocation7 + $0xc8] sm:$0xff] }
 0x18c   : > { %v651_v56 = vpack.c.bf16 %v639_v55, %v638_v54 }
 0x18d   : > { %1525 = vmatprep.mubr.bf16.mxu1 %v444_v59 }
 0x18e   : > { %1526 = vmatmul.mubr.bf16.gmra.mrb[4].mxu1 %v445_v57  ;;  %v640_v57 = vld [vmem:[#allocation7 + $0xc0] sm:$0xff] }
 0x18f   : > { %1577 = vmatprep.mubr.msk.bf16.mxu1 %vm364_vm0, %v2247_v10  ;;  %v652_v59 = vpack.c.bf16 %v641_v58, %v640_v57 }
 0x259   : > { %v1523_v61 = vpop.f32.mrb[0].mxu1 }
 0x25a   : > { %v520_v62 = vadd.f32 %v1523_v61, %v1369_v60  ;;  %v511_v63 = vpop.f32.mrb[1].mxu1  ;;  %v643_v61 = vld [vmem:[#allocation7 + $0xd8] sm:$0xff] }
 0x25b   : > { %v512_v3 = vadd.f32 %v1369_v60, %v511_v63  ;;  %v1524_v5 = vpop.f32.mrb[2].mxu1  ;;  %v644_v63 = vld [vmem:[#allocation7 + $0xe0] sm:$0xff] }
 0x25c   : > { %v544_v8 = vmax.f32 %v520_v62, 0.0  ;;  %v523_v9 = vadd.f32 %v1524_v5, %v1369_v60  ;;  %v514_v11 = vpop.f32.mrb[3].mxu1 }
 0x25d   : > { %v542_v13 = vmax.f32 %v512_v3, 0.0  ;;  %v515_v14 = vadd.f32 %v1369_v60, %v514_v11  ;;  %v645_v3 = vld [vmem:[#allocation7 + $0xe8] sm:$0xff] }
 0x25e   : > { %v545_v16 = vmax.f32 %v523_v9, 0.0  ;;  %v552_v18 = vadd.f32 %v544_v8, %v2233_v2  ;;  %v654_v5 = vpack.c.bf16 %v645_v3, %v644_v63  ;;  %v646_v8 = vld [vmem:[#allocation7 + $0xf0] sm:$0xff]  ;;  %v647_v9 = vld [vmem:[#allocation7 + $0xf8] sm:$0xff] }
 0x25f   : > { %v543_v17 = vmax.f32 %v515_v14, 0.0  ;;  %v550_v20 = vadd.f32 %v542_v13, %v2229_v0  ;;  %v655_v11 = vpack.c.bf16 %v647_v9, %v646_v8  ;;  %v820_v8 = vld [vmem:[#allocation7 + $0x108] sm:$0xff] }
 0x260   : > { %v553_v19 = vadd.f32 %v545_v16, %v2237_v4 }
 0x261   : > { %v551_v21 = vadd.f32 %v543_v17, %v2231_v1  ;;  %v1527_v22 = vpop.f32.mrb[4].mxu1 }
 0x262   : > { %v536_v23 = vadd.f32 %v1527_v22, %v1369_v60  ;;  %v527_v24 = vpop.f32.mrb[5].mxu1  ;;  %v559_v25 = vpack.c.bf16 %v553_v19, %v552_v18 }
 0x263   : > { %v528_v26 = vadd.f32 %v1369_v60, %v527_v24  ;;  %v1528_v27 = vpop.f32.mrb[6].mxu1  ;;  %v558_v28 = vpack.c.bf16 %v551_v21, %v550_v20 }
 0x264   : > { %v548_v29 = vmax.f32 %v536_v23, 0.0  ;;  %v539_v30 = vadd.f32 %v1528_v27, %v1369_v60  ;;  %v530_v32 = vpop.f32.mrb[7].mxu1 }
 0x265   : > { %v546_v33 = vmax.f32 %v528_v26, 0.0  ;;  %v531_v35 = vadd.f32 %v1369_v60, %v530_v32  ;;  %1529 = vmatprep.subr.bf16.mxu0 %v558_v28  ;;  %v642_v60 = vld [vmem:[#allocation7 + $0xd0] sm:$0xff]  ;;  %v1375_v26 = vld [vmem:[%s2393_s3 + $0x1] ss:$0 sm:$0xff] }
 0x266   : > { %v549_v36 = vmax.f32 %v539_v30, 0.0  ;;  %1530 = vmatpush3.bf16.msra.mxu0 %v558_v28  ;;  %v556_v38 = vadd.f32 %v548_v29, %v2251_v12  ;;  %v653_v62 = vpack.c.bf16 %v643_v61, %v642_v60 }
 0x267   : > { %v547_v37 = vmax.f32 %v531_v35, 0.0  ;;  %1531 = vmatprep.subr.bf16.mxu0 %v559_v25  ;;  %v554_v40 = vadd.f32 %v546_v33, %v2241_v6 }
 0x268   : > { %v557_v39 = vadd.f32 %v549_v36, %v2253_v15 }
 0x269   : > { %v555_v42 = vadd.f32 %v547_v37, %v2243_v7 }
 0x26a   : > { %1532 = vmatpush3.bf16.msra.mxu0 %v559_v25  ;;  %v561_v43 = vpack.c.bf16 %v557_v39, %v556_v38 }
 0x26b   : > { %v560_v44 = vpack.c.bf16 %v555_v42, %v554_v40 }
 0x26d   : > { %1533 = vmatprep.subr.bf16.mxu0 %v560_v44 }
 0x26e   : > { %1534 = vmatpush3.bf16.msra.mxu0 %v560_v44 }
 0x26f   : > { %1535 = vmatprep.subr.bf16.mxu0 %v561_v43 }
 0x272   : > { %1536 = vmatpush3.bf16.msra.mxu0 %v561_v43 }
 0x273   : > { %1545 = vmatprep.subr.bf16.mxu0 %v648_v47 }
 0x275   : > { %1538 = vmatmul.mubr.msk.bf16.vlgmr.msra.gmra.mrb[8].mxu0 %vm364_vm0, %v2263_v31 }
 0x276   : > { %1541 = vmatprep.mubr.msk.bf16.mxu0 %vm364_vm0, %v2265_v34  ;;  %1546 = vmatpush3.bf16.msra.mxu0 %v648_v47 }
 0x277   : > { %1547 = vmatprep.subr.bf16.mxu0 %v649_v50 }
 0x27a   : > { %1548 = vmatpush3.bf16.msra.mxu0 %v649_v50 }
 0x27b   : > { %1549 = vmatprep.subr.bf16.mxu0 %v650_v53 }
 0x27d   : > { %1542 = vmatmul.mubr.msk.bf16.gmra.mrb[12].mxu0 %vm364_vm0, %v2273_v41 }
 0x27e   : > { %1550 = vmatpush3.bf16.msra.mxu0 %v650_v53 }
 0x27f   : > { %1551 = vmatprep.subr.bf16.mxu0 %v651_v56 }
 0x282   : > { %1552 = vmatpush3.bf16.msra.mxu0 %v651_v56 }
 0x283   : > { %1553 = vmatprep.subr.bf16.mxu0 %v652_v59 }
 0x286   : > { %1554 = vmatpush3.bf16.msra.mxu0 %v652_v59 }
 0x287   : > { %1555 = vmatprep.subr.bf16.mxu0 %v653_v62 }
 0x28a   : > { %1556 = vmatpush3.bf16.msra.mxu0 %v653_v62 }
 0x28b   : > { %1557 = vmatprep.subr.bf16.mxu0 %v654_v5 }
 0x28e   : > { %1558 = vmatpush3.bf16.msra.mxu0 %v654_v5  ;;  %v819_v5 = vld [vmem:[#allocation7 + $0x100] sm:$0xff] }
 0x28f   : > { %1559 = vmatprep.subr.bf16.mxu0 %v655_v11  ;;  %v835_v9 = vpack.c.bf16 %v820_v8, %v819_v5 }
 0x292   : > { %1560 = vmatpush3.bf16.msra.mxu0 %v655_v11  ;;  %v821_v11 = vld [vmem:[#allocation7 + $0x110] sm:$0xff] }
 0x348   : > { %v1539_v13 = vpop.f32.mrb[8].mxu0 }
 0x349   : > { %v596_v14 = vpop.f32.mrb[9].mxu0 }
 0x34a   : > { %v1540_v16 = vpop.f32.mrb[10].mxu0 }
 0x34b   : > { %v628_v17 = vpack.c.bf16 %v1540_v16, %v1539_v13  ;;  %v599_v18 = vpop.f32.mrb[11].mxu0  ;;  %v822_v13 = vld [vmem:[#allocation7 + $0x118] sm:$0xff]  ;;  %v823_v16 = vld [vmem:[#allocation7 + $0x120] sm:$0xff] }
 0x34c   : > { %v627_v19 = vpack.c.bf16 %v599_v18, %v596_v14  ;;  %v836_v14 = vpack.c.bf16 %v822_v13, %v821_v11 }
 0x34e   : > { %1561 = vmatprep.mubr.bf16.mxu0 %v627_v19  ;;  %v825_v19 = vld [vmem:[#allocation7 + $0x130] sm:$0xff] }
 0x34f   : > { %1562 = vmatmul.mubr.bf16.vlgmr.msra.gmra.mrb[16].mxu0 %v628_v17  ;;  %v824_v17 = vld [vmem:[#allocation7 + $0x128] sm:$0xff] }
 0x350   : > { %v1543_v20 = vpop.f32.mrb[12].mxu0  ;;  %v837_v18 = vpack.c.bf16 %v824_v17, %v823_v16 }
 0x351   : > { %v612_v21 = vpop.f32.mrb[13].mxu0 }
 0x352   : > { %v1544_v22 = vpop.f32.mrb[14].mxu0 }
 0x353   : > { %v630_v23 = vpack.c.bf16 %v1544_v22, %v1543_v20  ;;  %v615_v24 = vpop.f32.mrb[15].mxu0  ;;  %v826_v20 = vld [vmem:[#allocation7 + $0x138] sm:$0xff]  ;;  %v827_v22 = vld [vmem:[#allocation7 + $0x140] sm:$0xff] }
 0x354   : > { %v629_v25 = vpack.c.bf16 %v615_v24, %v612_v21  ;;  %v838_v21 = vpack.c.bf16 %v826_v20, %v825_v19 }
 0x356   : > { %1565 = vmatprep.mubr.bf16.mxu0 %v629_v25  ;;  %v829_v25 = vld [vmem:[#allocation7 + $0x150] sm:$0xff] }
 0x357   : > { %1566 = vmatmul.mubr.bf16.gmra.mrb[20].mxu0 %v630_v23  ;;  %v828_v23 = vld [vmem:[#allocation7 + $0x148] sm:$0xff] }
 0x358   : > { %1617 = vmatprep.mubr.msk.bf16.mxu0 %vm364_vm0, %v2247_v10  ;;  %v839_v24 = vpack.c.bf16 %v828_v23, %v827_v22 }
 0x422   : > { %v1563_v27 = vpop.f32.mrb[16].mxu0 }
 0x423   : > { %v707_v28 = vadd.f32 %v1563_v27, %v1375_v26  ;;  %v698_v29 = vpop.f32.mrb[17].mxu0 }
 0x424   : > { %v699_v30 = vadd.f32 %v1375_v26, %v698_v29  ;;  %v1564_v32 = vpop.f32.mrb[18].mxu0  ;;  %v832_v29 = vld [vmem:[#allocation7 + $0x168] sm:$0xff] }
 0x425   : > { %v731_v33 = vmax.f32 %v707_v28, 0.0  ;;  %v710_v35 = vadd.f32 %v1564_v32, %v1375_v26  ;;  %v701_v36 = vpop.f32.mrb[19].mxu0  ;;  %v831_v28 = vld [vmem:[#allocation7 + $0x160] sm:$0xff]  ;;  %v833_v32 = vld [vmem:[#allocation7 + $0x170] sm:$0xff] }
 0x426   : > { %v729_v37 = vmax.f32 %v699_v30, 0.0  ;;  %v702_v38 = vadd.f32 %v1375_v26, %v701_v36  ;;  %v841_v30 = vpack.c.bf16 %v832_v29, %v831_v28  ;;  %v1008_v29 = vld [vmem:[#allocation7 + $0x190] sm:$0xff] }
 0x427   : > { %v732_v39 = vmax.f32 %v710_v35, 0.0  ;;  %v739_v42 = vadd.f32 %v731_v33, %v2233_v2  ;;  %v834_v33 = vld [vmem:[#allocation7 + $0x178] sm:$0xff] }
 0x428   : > { %v730_v40 = vmax.f32 %v702_v38, 0.0  ;;  %v737_v43 = vadd.f32 %v729_v37, %v2229_v0  ;;  %v842_v35 = vpack.c.bf16 %v834_v33, %v833_v32  ;;  %v1010_v32 = vld [vmem:[#allocation7 + $0x1a0] sm:$0xff]  ;;  %v1013_v33 = vld [vmem:[#allocation7 + $0x1b8] sm:$0xff] }
 0x429   : > { %v740_v10 = vadd.f32 %v732_v39, %v2237_v4 }
 0x42a   : > { %v738_v44 = vadd.f32 %v730_v40, %v2231_v1  ;;  %v1567_v45 = vpop.f32.mrb[20].mxu0 }
 0x42b   : > { %v723_v46 = vadd.f32 %v1567_v45, %v1375_v26  ;;  %v714_v47 = vpop.f32.mrb[21].mxu0  ;;  %v746_v48 = vpack.c.bf16 %v740_v10, %v739_v42 }
 0x42c   : > { %v715_v49 = vadd.f32 %v1375_v26, %v714_v47  ;;  %v1568_v50 = vpop.f32.mrb[22].mxu0  ;;  %v745_v51 = vpack.c.bf16 %v738_v44, %v737_v43 }
 0x42d   : > { %v735_v52 = vmax.f32 %v723_v46, 0.0  ;;  %v726_v53 = vadd.f32 %v1568_v50, %v1375_v26  ;;  %v717_v54 = vpop.f32.mrb[23].mxu0 }
 0x42e   : > { %v733_v55 = vmax.f32 %v715_v49, 0.0  ;;  %v718_v56 = vadd.f32 %v1375_v26, %v717_v54  ;;  %1569 = vmatprep.subr.bf16.mxu1 %v745_v51  ;;  %v830_v26 = vld [vmem:[#allocation7 + $0x158] sm:$0xff] }
 0x42f   : > { %v736_v57 = vmax.f32 %v726_v53, 0.0  ;;  %1570 = vmatpush3.bf16.msra.mxu1 %v745_v51  ;;  %v743_v59 = vadd.f32 %v735_v52, %v2251_v12  ;;  %v840_v27 = vpack.c.bf16 %v830_v26, %v829_v25  ;;  %v1006_v26 = vld [vmem:[#allocation7 + $0x180] sm:$0xff] }
 0x430   : > { %v734_v58 = vmax.f32 %v718_v56, 0.0  ;;  %1571 = vmatprep.subr.bf16.mxu1 %v746_v48  ;;  %v741_v61 = vadd.f32 %v733_v55, %v2241_v6 }
 0x431   : > { %v744_v60 = vadd.f32 %v736_v57, %v2253_v15 }
 0x432   : > { %v742_v62 = vadd.f32 %v734_v58, %v2243_v7 }
 0x433   : > { %1572 = vmatpush3.bf16.msra.mxu1 %v746_v48  ;;  %v748_v63 = vpack.c.bf16 %v744_v60, %v743_v59  ;;  %v1381_v48 = vld [vmem:[%s2393_s3 + $0x2] ss:$0 sm:$0xff] }
 0x434   : > { %v747_v3 = vpack.c.bf16 %v742_v62, %v741_v61 }
 0x436   : > { %1573 = vmatprep.subr.bf16.mxu1 %v747_v3 }
 0x437   : > { %1574 = vmatpush3.bf16.msra.mxu1 %v747_v3 }
 0x438   : > { %1575 = vmatprep.subr.bf16.mxu1 %v748_v63 }
 0x43b   : > { %1576 = vmatpush3.bf16.msra.mxu1 %v748_v63 }
 0x43c   : > { %1585 = vmatprep.subr.bf16.mxu1 %v835_v9 }
 0x43e   : > { %1578 = vmatmul.mubr.msk.bf16.vlgmr.msra.gmra.mrb[8].mxu1 %vm364_vm0, %v2263_v31 }
 0x43f   : > { %1581 = vmatprep.mubr.msk.bf16.mxu1 %vm364_vm0, %v2265_v34  ;;  %1586 = vmatpush3.bf16.msra.mxu1 %v835_v9 }
 0x440   : > { %1587 = vmatprep.subr.bf16.mxu1 %v836_v14 }
 0x443   : > { %1588 = vmatpush3.bf16.msra.mxu1 %v836_v14 }
 0x444   : > { %1589 = vmatprep.subr.bf16.mxu1 %v837_v18 }
 0x446   : > { %1582 = vmatmul.mubr.msk.bf16.gmra.mrb[12].mxu1 %vm364_vm0, %v2273_v41 }
 0x447   : > { %1590 = vmatpush3.bf16.msra.mxu1 %v837_v18 }
 0x448   : > { %1591 = vmatprep.subr.bf16.mxu1 %v838_v21 }
 0x44b   : > { %1592 = vmatpush3.bf16.msra.mxu1 %v838_v21 }
 0x44c   : > { %1593 = vmatprep.subr.bf16.mxu1 %v839_v24 }
 0x44f   : > { %1594 = vmatpush3.bf16.msra.mxu1 %v839_v24 }
 0x450   : > { %1595 = vmatprep.subr.bf16.mxu1 %v840_v27 }
 0x453   : > { %1596 = vmatpush3.bf16.msra.mxu1 %v840_v27  ;;  %v1007_v27 = vld [vmem:[#allocation7 + $0x188] sm:$0xff] }
 0x454   : > { %1597 = vmatprep.subr.bf16.mxu1 %v841_v30  ;;  %v1022_v28 = vpack.c.bf16 %v1007_v27, %v1006_v26 }
 0x457   : > { %1598 = vmatpush3.bf16.msra.mxu1 %v841_v30  ;;  %v1009_v30 = vld [vmem:[#allocation7 + $0x198] sm:$0xff] }
 0x458   : > { %1599 = vmatprep.subr.bf16.mxu1 %v842_v35 }
 0x45b   : > { %1600 = vmatpush3.bf16.msra.mxu1 %v842_v35 }
 0x511   : > { %v1579_v36 = vpop.f32.mrb[8].mxu1 }
 0x512   : > { %v783_v37 = vpop.f32.mrb[9].mxu1 }
 0x513   : > { %v1580_v38 = vpop.f32.mrb[10].mxu1 }
 0x514   : > { %v815_v39 = vpack.c.bf16 %v1580_v38, %v1579_v36  ;;  %v786_v40 = vpop.f32.mrb[11].mxu1  ;;  %v1014_v36 = vld [vmem:[#allocation7 + $0x1c0] sm:$0xff] }
 0x515   : > { %v814_v42 = vpack.c.bf16 %v786_v40, %v783_v37  ;;  %v1015_v37 = vld [vmem:[#allocation7 + $0x1c8] sm:$0xff]  ;;  %v1018_v40 = vld [vmem:[#allocation7 + $0x1e0] sm:$0xff] }
 0x516   : > { %v1026_v38 = vpack.c.bf16 %v1015_v37, %v1014_v36 }
 0x517   : > { %1601 = vmatprep.mubr.bf16.mxu1 %v814_v42  ;;  %v1019_v42 = vld [vmem:[#allocation7 + $0x1e8] sm:$0xff] }
 0x518   : > { %1602 = vmatmul.mubr.bf16.vlgmr.msra.gmra.mrb[16].mxu1 %v815_v39  ;;  %v1017_v39 = vld [vmem:[#allocation7 + $0x1d8] sm:$0xff] }
 0x519   : > { %v1583_v10 = vpop.f32.mrb[12].mxu1 }
 0x51a   : > { %v799_v43 = vpop.f32.mrb[13].mxu1 }
 0x51b   : > { %v1584_v44 = vpop.f32.mrb[14].mxu1 }
 0x51c   : > { %v817_v45 = vpack.c.bf16 %v1584_v44, %v1583_v10  ;;  %v802_v46 = vpop.f32.mrb[15].mxu1  ;;  %v1028_v10 = vpack.c.bf16 %v1019_v42, %v1018_v40  ;;  %v1021_v44 = vld [vmem:[#allocation7 + $0x1f8] sm:$0xff] }
 0x51d   : > { %v816_v47 = vpack.c.bf16 %v802_v46, %v799_v43  ;;  %v1020_v43 = vld [vmem:[#allocation7 + $0x1f0] sm:$0xff]  ;;  %v1116_v46 = vld [vmem:[#allocation8 + $0x8] sm:$0xff] }
 0x51f   : > { %1605 = vmatprep.mubr.bf16.mxu1 %v816_v47  ;;  %v1117_v47 = vld [vmem:[#allocation8 + $0x10] sm:$0xff] }
 0x520   : > { %1606 = vmatmul.mubr.bf16.gmra.mrb[20].mxu1 %v817_v45  ;;  %v1029_v45 = vpack.c.bf16 %v1021_v44, %v1020_v43 }
 0x5eb   : > { %v1603_v49 = vpop.f32.mrb[16].mxu1 }
 0x5ec   : > { %v894_v50 = vadd.f32 %v1603_v49, %v1381_v48  ;;  %v885_v51 = vpop.f32.mrb[17].mxu1  ;;  %v1118_v49 = vld [vmem:[#allocation8 + $0x18] sm:$0xff] }
 0x5ed   : > { %v886_v52 = vadd.f32 %v1381_v48, %v885_v51  ;;  %v1604_v53 = vpop.f32.mrb[18].mxu1  ;;  %v1119_v51 = vld [vmem:[#allocation8 + $0x20] sm:$0xff] }
 0x5ee   : > { %v918_v54 = vmax.f32 %v894_v50, 0.0  ;;  %v897_v55 = vadd.f32 %v1604_v53, %v1381_v48  ;;  %v888_v56 = vpop.f32.mrb[19].mxu1  ;;  %v1132_v50 = vpack.c.bf16 %v1118_v49, %v1117_v47 }
 0x5ef   : > { %v916_v57 = vmax.f32 %v886_v52, 0.0  ;;  %v889_v58 = vadd.f32 %v1381_v48, %v888_v56  ;;  %v1120_v52 = vld [vmem:[#allocation8 + $0x28] sm:$0xff] }
 0x5f0   : > { %v919_v59 = vmax.f32 %v897_v55, 0.0  ;;  %v926_v61 = vadd.f32 %v918_v54, %v2233_v2  ;;  %v1133_v53 = vpack.c.bf16 %v1120_v52, %v1119_v51  ;;  %v1121_v54 = vld [vmem:[#allocation8 + $0x30] sm:$0xff]  ;;  %v1122_v55 = vld [vmem:[#allocation8 + $0x38] sm:$0xff] }
 0x5f1   : > { %v917_v60 = vmax.f32 %v889_v58, 0.0  ;;  %v924_v63 = vadd.f32 %v916_v57, %v2229_v0  ;;  %v1134_v56 = vpack.c.bf16 %v1122_v55, %v1121_v54  ;;  %v1123_v57 = vld [vmem:[#allocation8 + $0x40] sm:$0xff]  ;;  %v1124_v58 = vld [vmem:[#allocation8 + $0x48] sm:$0xff] }
 0x5f2   : > { %v927_v62 = vadd.f32 %v919_v59, %v2237_v4  ;;  %v1135_v59 = vpack.c.bf16 %v1124_v58, %v1123_v57 }
 0x5f3   : > { %v925_v3 = vadd.f32 %v917_v60, %v2231_v1  ;;  %v1607_v5 = vpop.f32.mrb[20].mxu1  ;;  %v1125_v60 = vld [vmem:[#allocation8 + $0x50] sm:$0xff] }
 0x5f4   : > { %v910_v8 = vadd.f32 %v1607_v5, %v1381_v48  ;;  %v901_v9 = vpop.f32.mrb[21].mxu1  ;;  %v933_v11 = vpack.c.bf16 %v927_v62, %v926_v61  ;;  %v1126_v61 = vld [vmem:[#allocation8 + $0x58] sm:$0xff] }
 0x5f5   : > { %v902_v13 = vadd.f32 %v1381_v48, %v901_v9  ;;  %v1608_v14 = vpop.f32.mrb[22].mxu1  ;;  %v932_v16 = vpack.c.bf16 %v925_v3, %v924_v63  ;;  %v1136_v62 = vpack.c.bf16 %v1126_v61, %v1125_v60 }
 0x5f6   : > { %v922_v17 = vmax.f32 %v910_v8, 0.0  ;;  %v913_v18 = vadd.f32 %v1608_v14, %v1381_v48  ;;  %v904_v19 = vpop.f32.mrb[23].mxu1 }
 0x5f7   : > { %v920_v20 = vmax.f32 %v902_v13, 0.0  ;;  %v905_v21 = vadd.f32 %v1381_v48, %v904_v19  ;;  %1609 = vmatprep.subr.bf16.mxu0 %v932_v16 }
 0x5f8   : > { %v923_v2 = vmax.f32 %v913_v18, 0.0  ;;  %1610 = vmatpush3.bf16.msra.mxu0 %v932_v16  ;;  %v930_v0 = vadd.f32 %v922_v17, %v2251_v12  ;;  %v1023_v12 = vpack.c.bf16 %v1009_v30, %v1008_v29 }
 0x5f9   : > { %v921_v4 = vmax.f32 %v905_v21, 0.0  ;;  %1611 = vmatprep.subr.bf16.mxu0 %v933_v11  ;;  %v928_v22 = vadd.f32 %v920_v20, %v2241_v6  ;;  %v1127_v20 = vld [vmem:[#allocation8 + $0x60] sm:$0xff]  ;;  %v1128_v21 = vld [vmem:[#allocation8 + $0x68] sm:$0xff] }
 0x5fa   : > { %v931_v1 = vadd.f32 %v923_v2, %v2253_v15  ;;  %v1011_v15 = vld [vmem:[#allocation7 + $0x1a8] sm:$0xff]  ;;  %v1137_v2 = vpack.c.bf16 %v1128_v21, %v1127_v20 }
 0x5fb   : > { %v929_v23 = vadd.f32 %v921_v4, %v2243_v7  ;;  %v1024_v6 = vpack.c.bf16 %v1011_v15, %v1010_v32  ;;  %v1012_v7 = vld [vmem:[#allocation7 + $0x1b0] sm:$0xff] }
 0x5fc   : > { %1612 = vmatpush3.bf16.msra.mxu0 %v933_v11  ;;  %v935_v24 = vpack.c.bf16 %v931_v1, %v930_v0  ;;  %v1025_v35 = vpack.c.bf16 %v1013_v33, %v1012_v7  ;;  %v1129_v4 = vld [vmem:[#allocation8 + $0x70] sm:$0xff]  ;;  %v1130_v0 = vld [vmem:[#allocation8 + $0x78] sm:$0xff] }
 0x5fd   : > { %v934_v25 = vpack.c.bf16 %v929_v23, %v928_v22  ;;  %v1138_v1 = vpack.c.bf16 %v1130_v0, %v1129_v4  ;;  %v1387_v22 = vld [vmem:[%s2393_s3 + $0x3] ss:$0 sm:$0xff] }
 0x5ff   : > { %1613 = vmatprep.subr.bf16.mxu0 %v934_v25 }
 0x600   : > { %1614 = vmatpush3.bf16.msra.mxu0 %v934_v25 }
 0x601   : > { %1615 = vmatprep.subr.bf16.mxu0 %v935_v24 }
 0x604   : > { %1616 = vmatpush3.bf16.msra.mxu0 %v935_v24 }
 0x605   : > { %1625 = vmatprep.subr.bf16.mxu0 %v1022_v28 }
 0x607   : > { %1618 = vmatmul.mubr.msk.bf16.vlgmr.msra.gmra.mrb[24].mxu0 %vm364_vm0, %v2263_v31  ;;  %v1016_v31 = vld [vmem:[#allocation7 + $0x1d0] sm:$0xff] }
 0x608   : > { %1621 = vmatprep.mubr.msk.bf16.mxu0 %vm364_vm0, %v2265_v34  ;;  %1626 = vmatpush3.bf16.msra.mxu0 %v1022_v28  ;;  %v1027_v34 = vpack.c.bf16 %v1017_v39, %v1016_v31 }
 0x609   : > { %1627 = vmatprep.subr.bf16.mxu0 %v1023_v12 }
 0x60c   : > { %1628 = vmatpush3.bf16.msra.mxu0 %v1023_v12 }
 0x60d   : > { %1629 = vmatprep.subr.bf16.mxu0 %v1024_v6 }
 0x60f   : > { %1622 = vmatmul.mubr.msk.bf16.gmra.mrb[28].mxu0 %vm364_vm0, %v2273_v41  ;;  %v1115_v41 = vld [vmem:[#allocation8] sm:$0xff] }
 0x610   : > { %1630 = vmatpush3.bf16.msra.mxu0 %v1024_v6  ;;  %v1131_v48 = vpack.c.bf16 %v1116_v46, %v1115_v41  ;;  %v1388_v46 = vld [vmem:[%s2395_s5] ss:$0 sm:$0xff] }
 0x611   : > { %1631 = vmatprep.subr.bf16.mxu0 %v1025_v35 }
 0x612   : > { %1649 = vmatprep.subr.bf16.mxu1 %v1131_v48 }
 0x613   : > { %1650 = vmatpush3.bf16.msra.mxu1 %v1131_v48 }
 0x614   : > { %1632 = vmatpush3.bf16.msra.mxu0 %v1025_v35  ;;  %1651 = vmatprep.subr.bf16.mxu1 %v1132_v50 }
 0x615   : > { %1633 = vmatprep.subr.bf16.mxu0 %v1026_v38 }
 0x617   : > { %1652 = vmatpush3.bf16.msra.mxu1 %v1132_v50 }
 0x618   : > { %1634 = vmatpush3.bf16.msra.mxu0 %v1026_v38  ;;  %1653 = vmatprep.subr.bf16.mxu1 %v1133_v53 }
 0x619   : > { %1635 = vmatprep.subr.bf16.mxu0 %v1027_v34 }
 0x61b   : > { %1654 = vmatpush3.bf16.msra.mxu1 %v1133_v53 }
 0x61c   : > { %1636 = vmatpush3.bf16.msra.mxu0 %v1027_v34  ;;  %1655 = vmatprep.subr.bf16.mxu1 %v1134_v56 }
 0x61d   : > { %1637 = vmatprep.subr.bf16.mxu0 %v1028_v10 }
 0x61f   : > { %1656 = vmatpush3.bf16.msra.mxu1 %v1134_v56 }
 0x620   : > { %1638 = vmatpush3.bf16.msra.mxu0 %v1028_v10  ;;  %1657 = vmatprep.subr.bf16.mxu1 %v1135_v59 }
 0x621   : > { %1639 = vmatprep.subr.bf16.mxu0 %v1029_v45 }
 0x623   : > { %1658 = vmatpush3.bf16.msra.mxu1 %v1135_v59 }
 0x624   : > { %1640 = vmatpush3.bf16.msra.mxu0 %v1029_v45  ;;  %1659 = vmatprep.subr.bf16.mxu1 %v1136_v62 }
 0x627   : > { %1660 = vmatpush3.bf16.msra.mxu1 %v1136_v62 }
 0x628   : > { %1661 = vmatprep.subr.bf16.mxu1 %v1137_v2 }
 0x62b   : > { %1662 = vmatpush3.bf16.msra.mxu1 %v1137_v2 }
 0x62c   : > { %1663 = vmatprep.subr.bf16.mxu1 %v1138_v1 }
 0x62f   : > { %1664 = vmatpush3.bf16.msra.mxu1 %v1138_v1 }
 0x6da   : > { %v1619_v63 = vpop.f32.mrb[24].mxu0 }
 0x6db   : > { %v970_v3 = vpop.f32.mrb[25].mxu0 }
 0x6dc   : > { %v1620_v5 = vpop.f32.mrb[26].mxu0 }
 0x6dd   : > { %v1002_v8 = vpack.c.bf16 %v1620_v5, %v1619_v63  ;;  %v973_v9 = vpop.f32.mrb[27].mxu0 }
 0x6de   : > { %v1001_v11 = vpack.c.bf16 %v973_v9, %v970_v3 }
 0x6e0   : > { %1641 = vmatprep.mubr.bf16.mxu0 %v1001_v11 }
 0x6e1   : > { %1642 = vmatmul.mubr.bf16.vlgmr.msra.gmra.mrb[32].mxu0 %v1002_v8 }
 0x6e2   : > { %v1623_v13 = vpop.f32.mrb[28].mxu0 }
 0x6e3   : > { %v986_v14 = vpop.f32.mrb[29].mxu0 }
 0x6e4   : > { %v1624_v16 = vpop.f32.mrb[30].mxu0 }
 0x6e5   : > { %v1004_v17 = vpack.c.bf16 %v1624_v16, %v1623_v13  ;;  %v989_v18 = vpop.f32.mrb[31].mxu0 }
 0x6e6   : > { %v1003_v19 = vpack.c.bf16 %v989_v18, %v986_v14 }
 0x6e8   : > { %1645 = vmatprep.mubr.bf16.mxu0 %v1003_v19 }
 0x6e9   : > { %1646 = vmatmul.mubr.bf16.gmra.mrb[36].mxu0 %v1004_v17 }
 0x7b4   : > { %v1643_v23 = vpop.f32.mrb[32].mxu0 }
 0x7b5   : > { %v1081_v24 = vadd.f32 %v1643_v23, %v1387_v22  ;;  %v1072_v25 = vpop.f32.mrb[33].mxu0 }
 0x7b6   : > { %v1073_v26 = vadd.f32 %v1387_v22, %v1072_v25  ;;  %v1644_v27 = vpop.f32.mrb[34].mxu0 }
 0x7b7   : > { %v1084_v28 = vadd.f32 %v1644_v27, %v1387_v22  ;;  %v1075_v29 = vpop.f32.mrb[35].mxu0  ;;  %v1105_v12 = vmax.f32 %v1081_v24, 0.0 }
 0x7b8   : > { %v1076_v30 = vadd.f32 %v1387_v22, %v1075_v29  ;;  %v1103_v15 = vmax.f32 %v1073_v26, 0.0 }
 0x7b9   : > { %v1106_v32 = vmax.f32 %v1084_v28, 0.0 }
 0x7ba   : > { %v1104_v6 = vmax.f32 %v1076_v30, 0.0 }
 0x7bb   : > { %v1112_v7 = vpack.c.bf16 %v1106_v32, %v1105_v12 }
 0x7bc   : > { %v1111_v33 = vpack.c.bf16 %v1104_v6, %v1103_v15  ;;  %v1647_v35 = vpop.f32.mrb[36].mxu0 }
 0x7bd   : > { %v1097_v36 = vadd.f32 %v1647_v35, %v1387_v22  ;;  %v1088_v37 = vpop.f32.mrb[37].mxu0 }
 0x7be   : > { %v1089_v38 = vadd.f32 %v1387_v22, %v1088_v37  ;;  %v1648_v31 = vpop.f32.mrb[38].mxu0  ;;  %1665 = vmatprep.mubr.bf16.mxu1 %v1111_v33 }
 0x7bf   : > { %v1100_v39 = vadd.f32 %v1648_v31, %v1387_v22  ;;  %v1091_v34 = vpop.f32.mrb[39].mxu0  ;;  %1666 = vmatmul.mubr.bf16.vlgmr.msra.gmra.mrb[24].mxu1 %v1112_v7  ;;  %v1109_v42 = vmax.f32 %v1097_v36, 0.0 }
 0x7c0   : > { %v1092_v40 = vadd.f32 %v1387_v22, %v1091_v34  ;;  %v1107_v43 = vmax.f32 %v1089_v38, 0.0 }
 0x7c1   : > { %v1110_v10 = vmax.f32 %v1100_v39, 0.0 }
 0x7c2   : > { %v1108_v44 = vmax.f32 %v1092_v40, 0.0 }
 0x7c3   : > { %v1114_v45 = vpack.c.bf16 %v1110_v10, %v1109_v42 }
 0x7c4   : > { %v1113_v41 = vpack.c.bf16 %v1108_v44, %v1107_v43 }
 0x7c6   : > { %1669 = vmatprep.mubr.bf16.mxu1 %v1113_v41 }
 0x7c7   : > { %1670 = vmatmul.mubr.bf16.gmra.mrb[28].mxu1 %v1114_v45 }
 0x892   : > { %v1667_v47 = vpop.f32.mrb[24].mxu1 }
 0x893   : > { %v1189_v48 = vadd.f32 %v1667_v47, %v1388_v46  ;;  %v1180_v49 = vpop.f32.mrb[25].mxu1 }
 0x894   : > { %v1181_v50 = vadd.f32 %v1388_v46, %v1180_v49  ;;  %v1668_v51 = vpop.f32.mrb[26].mxu1 }
 0x895   : > { %1213 = vst [vmem:[%s338_s0 + $0x10] sm:$0xff] %v1189_v48  ;;  %v1192_v52 = vadd.f32 %v1668_v51, %v1388_v46  ;;  %v1183_v53 = vpop.f32.mrb[27].mxu1 }
 0x896   : > { %1211 = vst [vmem:[%s338_s0] sm:$0xff] %v1181_v50  ;;  %v1184_v54 = vadd.f32 %v1388_v46, %v1183_v53 }
 0x897   : > { %1214 = vst [vmem:[%s338_s0 + $0x18] sm:$0xff] %v1192_v52 }
 0x898   : > { %1212 = vst [vmem:[%s338_s0 + $0x8] sm:$0xff] %v1184_v54 }
 0x89a   : > { %v1671_v55 = vpop.f32.mrb[28].mxu1 }
 0x89b   : > { %v1205_v56 = vadd.f32 %v1671_v55, %v1388_v46  ;;  %v1196_v57 = vpop.f32.mrb[29].mxu1 }
 0x89c   : > { %v1197_v58 = vadd.f32 %v1388_v46, %v1196_v57  ;;  %v1672_v59 = vpop.f32.mrb[30].mxu1 }
 0x89d   : > { %1217 = vst [vmem:[%s338_s0 + $0x30] sm:$0xff] %v1205_v56  ;;  %v1208_v60 = vadd.f32 %v1672_v59, %v1388_v46  ;;  %v1199_v61 = vpop.f32.mrb[31].mxu1 }
 0x89e   : > { %1215 = vst [vmem:[%s338_s0 + $0x20] sm:$0xff] %v1197_v58  ;;  %v1200_v62 = vadd.f32 %v1388_v46, %v1199_v61 }
 0x89f   : > { %1218 = vst [vmem:[%s338_s0 + $0x38] sm:$0xff] %v1208_v60 }
 0x8a0   : > { %1216 = vst [vmem:[%s338_s0 + $0x28] sm:$0xff] %v1200_v62 }
 0x8a1   : > { %1878 = shalt.err (!%p1875_p11)
}
 0x8a2   : > { %s1879_s30 = scalar_lea.hbm %s2347_s19, 1024  ;;  %s1883_s13 = scalar_lea.hbm %s2396_s6, 4096 }
 0x8a3   : > { %p1880_p0 = scmp.ne.s32.totalorder %s2347_s19, %s1879_s30  ;;  %p1884_p13 = scmp.lt.u32.totalorder %s2347_s19, %s2396_s6 }
 0x8a4   : > { %p1885_p3 = scmp.lt.u32.totalorder %s1883_s13, %s1879_s30  ;;  %p1887_p9 = scmp.lt.u32.totalorder %s1879_s30, %s2347_s19 }
 0x8a5   : > { %p1881_p2 = pnand %p1880_p0, %p2107_p6 }
 0x8a6   : > { %p1886_p7 = por %p1885_p3, %p1884_p13 }
 0x8a7   : > { %p1882_p10 = pneg %p1881_p2 }
 0x8a8   : > { %p1888_p12 = por %p1887_p9, %p1886_p7 }
 0x8aa   : > { %p1889_p5 = pnand %p1888_p12, %p1882_p10 }
 0x8ac   : > { %1892 = shalt.err (!%p1889_p5)
}
 0x8ad   : > { %s1952_s17 = smov 128   ;;  %s1953_s0 = smov 8  }
 0x8ae   : > { %1685 = dma.vmem_to_hbm [thread:$0]  (%p2107_p6), %s2342_s18, 1024, %s2347_s19, %s1220_s25, %s1952_s17, %s1952_s17, %s1953_s0  }
 0x8af PF: > { %p1710_p1 = scmp.ge.s32.totalorder %s1943_s24, 2  ;;  %s1248_s12 = sand.u32 1, %s1931_s21  }
 0x8b0   : > { %p2425_p4 = scmp.ne.s32.totalorder %s2408_s28, 0  ;;  %s1249_s10 = scalar_lea.sflag [#allocation4], %s1248_s12 }
 0x8b2   : > { %p1702_p8 = pnand %p1710_p1, %p2425_p4 }
 0x8b4   : > { %1926 = dma.done.wait (!%p1702_p8), %s1249_s10, 1024  }
 0x8b5   : > { %1928 = vsyncadd (!%p1702_p8), %s1249_s10, 4294966272  ;;  %p23_p11 = scmp.ge.s32.totalorder %s2097_s8, 6   ;;  %s2426_s21 = smov %s1935_s22 }
 0x8b6   : > { %s2427_s22 = smov %s1939_s23  ;;  %s2428_s23 = smov %s2113_s11 }
 0x8b7   : > { %s2429_s24 = smov %s2097_s8  ;;  %25 = sbr.rel (!%p23_p11) target bundleno = 12 (0xc), region = 116 }
 0x8be   :  { %1254 = vsyncpa [#allocation3], 1 }
 0x8bf   :  { %1256 = vsyncpa [#allocation3 + $0x1], 1 }
 0x8c0   :  { %1257 = vsyncpa [#allocation6], 1 }
 0x8c1   :  { %1259 = vsyncpa [#allocation6 + $0x1], 1 }
 0x8c2   :  { %1260 = vsyncpa [#allocation9], 1 }
 0x8c3   :  { %1261 = vsyncpa [#allocation4], 1 }
 0x8c4   :  { %1263 = vsyncpa [#allocation4 + $0x1], 1 }

</bundles_post_ra>
